<compile_context>
chip_gen: v5e
topology: v5e:2x2
jax: 0.10.0
libtpu: 0.0.40
codegen_flags: <defaults>
</compile_context>

<pallas_src>
import jax
import jax.numpy as jnp
from jax import lax
from jax.experimental import pallas as pl
from jax.experimental.pallas import tpu as pltpu

_NORM_EPS = 1e-30  # guard only; zero-padded rows/templates contribute exactly 0


def _round_up(x, m):
    return (x + m - 1) // m * m


def _tpu_generation_and_vmem():
    """Best-effort (generation, vmem_capacity_bytes) query with fallbacks."""
    vmem = None
    try:
        vmem = int(pltpu.get_tpu_info().vmem_capacity_bytes)
    except Exception:
        vmem = None
    kind = ""
    try:
        kind = jax.devices()[0].device_kind.lower()
    except Exception:
        pass
    if ("v5 lite" in kind) or ("v5e" in kind) or ("v5lite" in kind):
        gen = "v5e"
    elif "v6" in kind:
        gen = "v6e"
    elif "v7" in kind:
        gen = "v7x"
    elif vmem is not None and vmem <= 64 * 2**20:
        gen = "v7x"
    else:
        gen = "unknown"
    if vmem is None:
        vmem = 64 * 2**20 if gen == "v7x" else 128 * 2**20
    return gen, vmem


def _prompt_extractor_kernel(pooled_ref, proj_ref, out_ref):
    """Grid = (noun_tiles [parallel], template_chunks [arbitrary, trailing]).

    pooled_ref : [tc, tn, Wp]  bf16  pooled transformer features (one T-chunk)
    proj_ref   : [Wp, Dp]      bf16  CLIP text_projection (single-buffered)
    out_ref    : [tn, Dp]      f32   resident accumulator / final output tile
    """
    t = pl.program_id(1)
    num_t = pl.num_programs(1)
    tc, tn, wp = pooled_ref.shape
    dp = out_ref.shape[-1]

    @pl.when(t == 0)
    def _():
        out_ref[...] = jnp.zeros_like(out_ref)

    # One fused MXU matmul for the whole template chunk (M = tc*tn rows);
    # collapsing the leading dims is a free view since tn is a multiple of the
    # bf16 sublane tile.  bf16 in / f32 accumulation.
    lhs = pooled_ref[...].reshape(tc * tn, wp)
    feats = jnp.dot(lhs, proj_ref[...],
                    preferred_element_type=jnp.float32).reshape(tc, tn, dp)

    # Per-template L2 normalize (rsqrt -> EUP slot; eps guards exactly-zero
    # padded rows/templates so they contribute exactly 0), then sum over the
    # chunk's templates into the resident f32 output tile.
    ssq = jnp.sum(feats * feats, axis=-1, keepdims=True)
    normed = feats * lax.rsqrt(jnp.maximum(ssq, _NORM_EPS))
    out_ref[...] += jnp.sum(normed, axis=0)

    @pl.when(t == num_t - 1)
    def _():
        # mean over templates then renormalize; the 1/T factor cancels in the
        # final normalization, so normalize the accumulated sum directly.
        acc = out_ref[...]
        s = jnp.sum(acc * acc, axis=-1, keepdims=True)
        out_ref[...] = acc * lax.rsqrt(jnp.maximum(s, _NORM_EPS))


def _build_call(Tp, Np, Wp, Dp, tn, tc, vmem_limit, single_buffer_proj):
    n_tiles = Np // tn
    t_chunks = Tp // tc
    proj_kwargs = {}
    if single_buffer_proj:
        # Constant index_map -> fetched once; one buffer is enough.
        proj_kwargs["pipeline_mode"] = pl.Buffered(1)
    cost = pl.CostEstimate(
        flops=2 * Tp * Np * Wp * Dp,
        transcendentals=(Tp + 1) * Np,
        bytes_accessed=Tp * Np * Wp * 2 + Wp * Dp * 2 + Np * Dp * 4,
    )
    return pl.pallas_call(
        _prompt_extractor_kernel,
        out_shape=jax.ShapeDtypeStruct((Np, Dp), jnp.float32),
        grid_spec=pltpu.PrefetchScalarGridSpec(
            num_scalar_prefetch=0,
            grid=(n_tiles, t_chunks),          # reduction (template) axis trailing
            in_specs=[
                pl.BlockSpec((tc, tn, Wp), lambda n, t: (t, n, 0)),
                pl.BlockSpec((Wp, Dp), lambda n, t: (0, 0), **proj_kwargs),
            ],
            out_specs=pl.BlockSpec((tn, Dp), lambda n, t: (n, 0)),
        ),
        compiler_params=pltpu.CompilerParams(
            dimension_semantics=("parallel", "arbitrary"),
            vmem_limit_bytes=vmem_limit,
        ),
        cost_estimate=cost,
    )


def predefined_prompt_features(pooled, text_projection, *, tn=None, tc=None):
    """pooled: [T, N, W], text_projection: [W, D] -> [N, D] float32."""
    T, N, W = pooled.shape
    W2, D = text_projection.shape
    assert W2 == W, (W2, W)

    gen, vmem_cap = _tpu_generation_and_vmem()

    # Lane-dense padding: last dims to multiples of 128 (no-op for production
    # CLIP widths 512/768).
    Wp = _round_up(W, 128)
    Dp = _round_up(D, 128)

    # Noun tile: 256 on v6e/v7x (fills the 256-wide MXU), 128 on v5e.  On v7x
    # shrink so the parallel noun axis has >= 2 tiles (both TCs busy).
    if tn is None:
        base = 128 if gen == "v5e" else 256
        tn = min(base, _round_up(N, 16))
        if gen == "v7x" and N > 16 and (_round_up(N, tn) // tn) < 2:
            tn = _round_up(-(-N // 2), 16)
    Np = _round_up(N, tn)

    # Per-generation VMEM cap (headroom for compiler/internal scratch).
    vmem_limit_cap = 40 * 2**20 if vmem_cap <= 64 * 2**20 else 100 * 2**20

    # Template chunk: as large as fits the VMEM budget (amortizes ~0.35us/step
    # pipeline overhead + bigger HBM->VMEM DMAs), clipped to T.
    if tc is None:
        tc_max = 16 if gen == "v7x" else 32
        budget = int(0.6 * vmem_limit_cap)
        tc = 1
        cand = tc_max
        while cand >= 1:
            use = (2 * cand * tn * Wp * 2      # pooled tile, bf16, double-buffered
                   + Wp * Dp * 2               # projection, bf16, single buffer
                   + 2 * tn * Dp * 4           # output tile, f32
                   + 2 * cand * tn * Dp * 4)   # feats/normed f32 intermediates
            if use <= budget:
                tc = cand
                break
            cand //= 2
        tc = max(1, min(tc, T))
    Tp = _round_up(T, tc)

    tile_bytes = (2 * tc * tn * Wp * 2 + Wp * Dp * 2
                  + 2 * tn * Dp * 4 + 2 * tc * tn * Dp * 4)
    vmem_limit = int(min(max(2 * tile_bytes, 16 * 2**20), vmem_limit_cap))

    # bf16 inputs (half DMA traffic + native MXU dtype).  Padded HBM copies
    # are only materialized when padding is actually required.
    pooled_bf16 = pooled.astype(jnp.bfloat16)
    if (Tp, Np, Wp) != (T, N, W):
        pooled_p = jnp.zeros((Tp, Np, Wp), jnp.bfloat16)
        pooled_p = pooled_p.at[:T, :N, :W].set(pooled_bf16)
    else:
        pooled_p = pooled_bf16
    proj_bf16 = text_projection.astype(jnp.bfloat16)
    if (Wp, Dp) != (W, D):
        proj_p = jnp.zeros((Wp, Dp), jnp.bfloat16)
        proj_p = proj_p.at[:W, :D].set(proj_bf16)
    else:
        proj_p = proj_bf16

    try:
        out_p = _build_call(Tp, Np, Wp, Dp, tn, tc, vmem_limit,
                            single_buffer_proj=True)(pooled_p, proj_p)
    except Exception:
        # Fallback if this JAX build rejects pipeline_mode=pl.Buffered(1);
        # only costs one extra (Wp, Dp) bf16 buffer in VMEM.
        out_p = _build_call(Tp, Np, Wp, Dp, tn, tc, vmem_limit,
                            single_buffer_proj=False)(pooled_p, proj_p)

    return out_p[:N, :D]


def _reference(pooled, text_projection):
    """Pure-JAX reference mirroring the PyTorch forward."""
    feats = jnp.einsum("tnw,wd->tnd", pooled, text_projection,
                       precision=jax.lax.Precision.HIGHEST)
    feats = feats / jnp.linalg.norm(feats, axis=-1, keepdims=True)
    mean = feats.mean(axis=0)
    return mean / jnp.linalg.norm(mean, axis=-1, keepdims=True)


if __name__ == "__main__":
    key = jax.random.PRNGKey(0)
    k_tok, k_emb, k_pos, k_proj = jax.random.split(key, 4)

    # Small shapes consistent with the forward:
    T = 4    # number of templates
    N = 8    # number of nouns (class names)
    L = 8    # token context length
    V = 128  # vocab size
    W = 64   # transformer width
    D = 32   # CLIP embed dim (text_projection output)

    # --- glue: deterministic stand-in for tokenize + transformer body ---
    tokens = jax.random.randint(k_tok, (T, N, L), 0, V)               # [T,N,L]
    tok_embed = jax.random.normal(k_emb, (V, W), jnp.float32) * 0.02  # [V,W]
    pos_embed = jax.random.normal(k_pos, (L, W), jnp.float32) * 0.01  # [L,W]
    text_projection = jax.random.normal(k_proj, (W, D), jnp.float32) * 0.05

    # embedding lookup + positional add + mean pool -> pooled features [T,N,W]
    pooled = (tok_embed[tokens] + pos_embed[None, None]).mean(axis=2)
    pooled = pooled.astype(jnp.float32)

    # --- Pallas kernel: projection matmul + normalize + mean + normalize ---
    out = predefined_prompt_features(pooled, text_projection)
    out = jax.block_until_ready(out)

    # Reference with the same bf16 input quantization as the kernel.
    ref = _reference(pooled.astype(jnp.bfloat16).astype(jnp.float32),
                     text_projection.astype(jnp.bfloat16).astype(jnp.float32))
    assert out.shape == (N, D)
    err = float(jnp.max(jnp.abs(out - ref)))
    assert jnp.allclose(out, ref, atol=1e-3, rtol=1e-3), err

    print("KERNEL_OK")
</pallas_src>

<mosaic_0001>
module attributes {stable_mosaic.version = 11 : i64} {
  func.func @_prompt_extractor_kernel(%arg0: i32, %arg1: i32, %arg2: memref<4x16x128xbf16, #tpu.memory_space<vmem>>, %arg3: memref<128x128xbf16, #tpu.memory_space<vmem>>, %arg4: memref<16x128xf32, #tpu.memory_space<vmem>>) attributes {dimension_semantics = [#tpu.dimension_semantics<parallel>, #tpu.dimension_semantics<arbitrary>], iteration_bounds = array<i64: 1, 1>, scalar_prefetch = 0 : i64, scratch_operands = 0 : i64, tpu.core_type = #tpu.core_type<tc>, window_params = [{transform_indices = @transform_0, window_bounds = array<i64: 4, 16, 128>}, {pipeline_mode = #tpu.pipeline_mode<synchronous>, transform_indices = @transform_1, window_bounds = array<i64: 128, 128>}, {transform_indices = @transform_2, window_bounds = array<i64: 16, 128>}]} {
    %c0_i32 = arith.constant 0 : i32
    %0 = arith.cmpi eq, %arg1, %c0_i32 : i32
    %1 = arith.extui %0 : i1 to i32
    %c0_i32_0 = arith.constant 0 : i32
    %2 = arith.cmpi ne, %1, %c0_i32_0 : i32
    scf.if %2 {
      %cst_14 = arith.constant 0.000000e+00 : f32
      %23 = vector.broadcast %cst_14 : f32 to vector<16x128xf32>
      %c0_15 = arith.constant 0 : index
      %c0_16 = arith.constant 0 : index
      %24 = vector.load %arg4[%c0_15, %c0_16] : memref<16x128xf32, #tpu.memory_space<vmem>>, vector<16x128xf32>
      tpu.vector_store %arg4[%c0_15, %c0_16], %23 {strides = array<i32>} : memref<16x128xf32, #tpu.memory_space<vmem>>, vector<16x128xf32>,
    } else {
    }
    %c0 = arith.constant 0 : index
    %c0_1 = arith.constant 0 : index
    %c0_2 = arith.constant 0 : index
    %3 = vector.load %arg2[%c0, %c0_1, %c0_2] : memref<4x16x128xbf16, #tpu.memory_space<vmem>>, vector<4x16x128xbf16>
    %4 = vector.shape_cast %3 : vector<4x16x128xbf16> to vector<64x128xbf16>
    %c0_3 = arith.constant 0 : index
    %c0_4 = arith.constant 0 : index
    %5 = vector.load %arg3[%c0_3, %c0_4] : memref<128x128xbf16, #tpu.memory_space<vmem>>, vector<128x128xbf16>
    %cst = arith.constant dense<0.000000e+00> : vector<64x128xf32>
    %6 = tpu.matmul %4, %5, %cst {dimension_numbers = #tpu.dot_dimension_numbers<[1], [0], [0], [1], [0, 0, 1, 1], [], []>} : vector<64x128xbf16>, vector<128x128xbf16>, vector<64x128xf32> -> vector<64x128xf32>
    %7 = vector.shape_cast %6 : vector<64x128xf32> to vector<4x16x128xf32>
    %8 = arith.mulf %7, %7 : vector<4x16x128xf32>
    %cst_5 = arith.constant dense<0.000000e+00> : vector<4x16xf32>
    %9 = vector.multi_reduction <add>, %8, %cst_5 [2] : vector<4x16x128xf32> to vector<4x16xf32>
    %10 = vector.shape_cast %9 : vector<4x16xf32> to vector<4x16x1xf32>
    %cst_6 = arith.constant 1.000000e-30 : f32
    %11 = vector.broadcast %cst_6 : f32 to vector<4x16x1xf32>
    %12 = arith.maximumf %10, %11 : vector<4x16x1xf32>
    %13 = math.rsqrt %12 : vector<4x16x1xf32>
    %14 = vector.broadcast %13 : vector<4x16x1xf32> to vector<4x16x128xf32>
    %15 = arith.mulf %7, %14 : vector<4x16x128xf32>
    %c0_7 = arith.constant 0 : index
    %c0_8 = arith.constant 0 : index
    %16 = vector.load %arg4[%c0_7, %c0_8] : memref<16x128xf32, #tpu.memory_space<vmem>>, vector<16x128xf32>
    %cst_9 = arith.constant dense<0.000000e+00> : vector<16x128xf32>
    %17 = vector.multi_reduction <add>, %15, %cst_9 [0] : vector<4x16x128xf32> to vector<16x128xf32>
    %18 = arith.addf %16, %17 : vector<16x128xf32>
    %c0_10 = arith.constant 0 : index
    %c0_11 = arith.constant 0 : index
    %19 = vector.load %arg4[%c0_10, %c0_11] : memref<16x128xf32, #tpu.memory_space<vmem>>, vector<16x128xf32>
    tpu.vector_store %arg4[%c0_10, %c0_11], %18 {strides = array<i32>} : memref<16x128xf32, #tpu.memory_space<vmem>>, vector<16x128xf32>,
    %c0_i32_12 = arith.constant 0 : i32
    %20 = arith.cmpi eq, %arg1, %c0_i32_12 : i32
    %21 = arith.extui %20 : i1 to i32
    %c0_i32_13 = arith.constant 0 : i32
    %22 = arith.cmpi ne, %21, %c0_i32_13 : i32
    scf.if %22 {
      %c0_14 = arith.constant 0 : index
      %c0_15 = arith.constant 0 : index
      %23 = vector.load %arg4[%c0_14, %c0_15] : memref<16x128xf32, #tpu.memory_space<vmem>>, vector<16x128xf32>
      %24 = arith.mulf %23, %23 : vector<16x128xf32>
      %cst_16 = arith.constant dense<0.000000e+00> : vector<16xf32>
      %25 = vector.multi_reduction <add>, %24, %cst_16 [1] : vector<16x128xf32> to vector<16xf32>
      %26 = vector.shape_cast %25 : vector<16xf32> to vector<16x1xf32>
      %cst_17 = arith.constant 1.000000e-30 : f32
      %27 = vector.broadcast %cst_17 : f32 to vector<16x1xf32>
      %28 = arith.maximumf %26, %27 : vector<16x1xf32>
      %29 = math.rsqrt %28 : vector<16x1xf32>
      %30 = vector.broadcast %29 : vector<16x1xf32> to vector<16x128xf32>
      %31 = arith.mulf %23, %30 : vector<16x128xf32>
      %c0_18 = arith.constant 0 : index
      %c0_19 = arith.constant 0 : index
      %32 = vector.load %arg4[%c0_18, %c0_19] : memref<16x128xf32, #tpu.memory_space<vmem>>, vector<16x128xf32>
      tpu.vector_store %arg4[%c0_18, %c0_19], %31 {strides = array<i32>} : memref<16x128xf32, #tpu.memory_space<vmem>>, vector<16x128xf32>,
    } else {
    }
    return
  }
  func.func @transform_0(%arg0: i32, %arg1: i32) -> (i32, i32, i32) {
    %c0_i32 = arith.constant 0 : i32
    %c0_i32_0 = arith.constant 0 : i32
    return %arg1, %arg0, %c0_i32 : i32, i32, i32
  }
  func.func @transform_1(%arg0: i32, %arg1: i32) -> (i32, i32) {
    %c0_i32 = arith.constant 0 : i32
    %c0_i32_0 = arith.constant 0 : i32
    %c0_i32_1 = arith.constant 0 : i32
    return %c0_i32, %c0_i32_0 : i32, i32
  }
  func.func @transform_2(%arg0: i32, %arg1: i32) -> (i32, i32) {
    %c0_i32 = arith.constant 0 : i32
    %c0_i32_0 = arith.constant 0 : i32
    return %arg0, %c0_i32 : i32, i32
  }
}

module attributes {stable_mosaic.version = 11 : i64} {
  func.func @_prompt_extractor_kernel(%arg0: i32, %arg1: i32, %arg2: memref<4x16x128xbf16, #tpu.memory_space<vmem>>, %arg3: memref<128x128xbf16, #tpu.memory_space<vmem>>, %arg4: memref<16x128xf32, #tpu.memory_space<vmem>>) attributes {dimension_semantics = [#tpu.dimension_semantics<parallel>, #tpu.dimension_semantics<arbitrary>], iteration_bounds = array<i64: 1, 1>, scalar_prefetch = 0 : i64, scratch_operands = 0 : i64, tpu.core_type = #tpu.core_type<tc>, window_params = [{transform_indices = @transform_0, window_bounds = array<i64: 4, 16, 128>}, {pipeline_mode = #tpu.pipeline_mode<synchronous>, transform_indices = @transform_1, window_bounds = array<i64: 128, 128>}, {transform_indices = @transform_2, window_bounds = array<i64: 16, 128>}]} {
    %c0_i32 = arith.constant 0 : i32
    %0 = arith.cmpi eq, %arg1, %c0_i32 : i32
    %1 = arith.extui %0 : i1 to i32
    %c0_i32_0 = arith.constant 0 : i32
    %2 = arith.cmpi ne, %1, %c0_i32_0 : i32
    scf.if %2 {
      %cst_14 = arith.constant 0.000000e+00 : f32
      %23 = vector.broadcast %cst_14 : f32 to vector<16x128xf32>
      %c0_15 = arith.constant 0 : index
      %c0_16 = arith.constant 0 : index
      %24 = vector.load %arg4[%c0_15, %c0_16] : memref<16x128xf32, #tpu.memory_space<vmem>>, vector<16x128xf32>
      tpu.vector_store %arg4[%c0_15, %c0_16], %23 {strides = array<i32>} : memref<16x128xf32, #tpu.memory_space<vmem>>, vector<16x128xf32>,
    } else {
    }
    %c0 = arith.constant 0 : index
    %c0_1 = arith.constant 0 : index
    %c0_2 = arith.constant 0 : index
    %3 = vector.load %arg2[%c0, %c0_1, %c0_2] : memref<4x16x128xbf16, #tpu.memory_space<vmem>>, vector<4x16x128xbf16>
    %4 = vector.shape_cast %3 : vector<4x16x128xbf16> to vector<64x128xbf16>
    %c0_3 = arith.constant 0 : index
    %c0_4 = arith.constant 0 : index
    %5 = vector.load %arg3[%c0_3, %c0_4] : memref<128x128xbf16, #tpu.memory_space<vmem>>, vector<128x128xbf16>
    %cst = arith.constant dense<0.000000e+00> : vector<64x128xf32>
    %6 = tpu.matmul %4, %5, %cst {dimension_numbers = #tpu.dot_dimension_numbers<[1], [0], [0], [1], [0, 0, 1, 1], [], []>} : vector<64x128xbf16>, vector<128x128xbf16>, vector<64x128xf32> -> vector<64x128xf32>
    %7 = vector.shape_cast %6 : vector<64x128xf32> to vector<4x16x128xf32>
    %8 = arith.mulf %7, %7 : vector<4x16x128xf32>
    %cst_5 = arith.constant dense<0.000000e+00> : vector<4x16xf32>
    %9 = vector.multi_reduction <add>, %8, %cst_5 [2] : vector<4x16x128xf32> to vector<4x16xf32>
    %10 = vector.shape_cast %9 : vector<4x16xf32> to vector<4x16x1xf32>
    %cst_6 = arith.constant 1.000000e-30 : f32
    %11 = vector.broadcast %cst_6 : f32 to vector<4x16x1xf32>
    %12 = arith.maximumf %10, %11 : vector<4x16x1xf32>
    %13 = math.rsqrt %12 : vector<4x16x1xf32>
    %14 = vector.broadcast %13 : vector<4x16x1xf32> to vector<4x16x128xf32>
    %15 = arith.mulf %7, %14 : vector<4x16x128xf32>
    %c0_7 = arith.constant 0 : index
    %c0_8 = arith.constant 0 : index
    %16 = vector.load %arg4[%c0_7, %c0_8] : memref<16x128xf32, #tpu.memory_space<vmem>>, vector<16x128xf32>
    %cst_9 = arith.constant dense<0.000000e+00> : vector<16x128xf32>
    %17 = vector.multi_reduction <add>, %15, %cst_9 [0] : vector<4x16x128xf32> to vector<16x128xf32>
    %18 = arith.addf %16, %17 : vector<16x128xf32>
    %c0_10 = arith.constant 0 : index
    %c0_11 = arith.constant 0 : index
    %19 = vector.load %arg4[%c0_10, %c0_11] : memref<16x128xf32, #tpu.memory_space<vmem>>, vector<16x128xf32>
    tpu.vector_store %arg4[%c0_10, %c0_11], %18 {strides = array<i32>} : memref<16x128xf32, #tpu.memory_space<vmem>>, vector<16x128xf32>,
    %c0_i32_12 = arith.constant 0 : i32
    %20 = arith.cmpi eq, %arg1, %c0_i32_12 : i32
    %21 = arith.extui %20 : i1 to i32
    %c0_i32_13 = arith.constant 0 : i32
    %22 = arith.cmpi ne, %21, %c0_i32_13 : i32
    scf.if %22 {
      %c0_14 = arith.constant 0 : index
      %c0_15 = arith.constant 0 : index
      %23 = vector.load %arg4[%c0_14, %c0_15] : memref<16x128xf32, #tpu.memory_space<vmem>>, vector<16x128xf32>
      %24 = arith.mulf %23, %23 : vector<16x128xf32>
      %cst_16 = arith.constant dense<0.000000e+00> : vector<16xf32>
      %25 = vector.multi_reduction <add>, %24, %cst_16 [1] : vector<16x128xf32> to vector<16xf32>
      %26 = vector.shape_cast %25 : vector<16xf32> to vector<16x1xf32>
      %cst_17 = arith.constant 1.000000e-30 : f32
      %27 = vector.broadcast %cst_17 : f32 to vector<16x1xf32>
      %28 = arith.maximumf %26, %27 : vector<16x1xf32>
      %29 = math.rsqrt %28 : vector<16x1xf32>
      %30 = vector.broadcast %29 : vector<16x1xf32> to vector<16x128xf32>
      %31 = arith.mulf %23, %30 : vector<16x128xf32>
      %c0_18 = arith.constant 0 : index
      %c0_19 = arith.constant 0 : index
      %32 = vector.load %arg4[%c0_18, %c0_19] : memref<16x128xf32, #tpu.memory_space<vmem>>, vector<16x128xf32>
      tpu.vector_store %arg4[%c0_18, %c0_19], %31 {strides = array<i32>} : memref<16x128xf32, #tpu.memory_space<vmem>>, vector<16x128xf32>,
    } else {
    }
    return
  }
  func.func @transform_0(%arg0: i32, %arg1: i32) -> (i32, i32, i32) {
    %c0_i32 = arith.constant 0 : i32
    %c0_i32_0 = arith.constant 0 : i32
    return %arg1, %arg0, %c0_i32 : i32, i32, i32
  }
  func.func @transform_1(%arg0: i32, %arg1: i32) -> (i32, i32) {
    %c0_i32 = arith.constant 0 : i32
    %c0_i32_0 = arith.constant 0 : i32
    %c0_i32_1 = arith.constant 0 : i32
    return %c0_i32, %c0_i32_0 : i32, i32
  }
  func.func @transform_2(%arg0: i32, %arg1: i32) -> (i32, i32) {
    %c0_i32 = arith.constant 0 : i32
    %c0_i32_0 = arith.constant 0 : i32
    return %arg0, %c0_i32 : i32, i32
  }
}

</mosaic_0001>

<bundles_post_ra>
// kernel: tpu_custom_call.1
= control target key start
LH: loop header
LB: loop body
LE: loop exit
PB: predicated region body
PF: predicated region fallthrough
CT: control target
= control target key end

     0   :  { %7 = vsyncpa [#allocation3], 0  ;;  %s709_s0 = inlined_call_operand.hbm [shape: bf16[4,16,128], index: 0, kind: input, shape index: {}]   ;;  %s710_s1 = inlined_call_operand.hbm [shape: bf16[128,128], index: 1, kind: input, shape index: {}]   ;;  %s711_s2 = inlined_call_operand.hbm [shape: f32[16,128], index: 2, kind: output, shape index: {}]  }
   0x1   :  { %8 = vsyncpa [#allocation6], 0 }
   0x2   :  { %9 = vsyncpa [#allocation4], 0  ;;  %s14_s11 = sshll.u32 %s709_s0, 4  ;;  %s554_s12 = smov [#allocation2]   ;;  %s15_s11 = int_to_ptr.hbm [resolvable:$true] %s14_s11 }
   0x3   :  { %s16_s13 = sshll.u32 %s554_s12, 4  ;;  %s27_s16 = sshll.u32 %s710_s1, 4  ;;  %s17_s13 = int_to_ptr.vmem [resolvable:$true] %s16_s13  ;;  %s28_s16 = int_to_ptr.hbm [resolvable:$true] %s27_s16 }
   0x4   :  { %s555_s17 = smov 64   ;;  %s556_s18 = smov 4  }
   0x5   :  { %22 = dma.hbm_to_vmem [thread:$0]  %s15_s11, 512, %s17_s13, [#allocation3], %s555_s17, %s555_s17, %s556_s18  }
   0x6   :  { %s557_s19 = smov [#allocation5]  }
   0x7   :  { %s29_s20 = sshll.u32 %s557_s19, 4  ;;  %s30_s20 = int_to_ptr.vmem [resolvable:$true] %s29_s20 }
   0x8   :  { %35 = dma.hbm_to_vmem [thread:$0]  %s28_s16, 1024, %s30_s20, [#allocation6], %s555_s17, %s555_s17, %s556_s18  }
   0x9   :  { %548 = dma.done.wait [#allocation3], 512  }
   0xa   :  { %549 = vsyncadd [#allocation3], 4294966784 }
   0xb   :  { %550 = dma.done.wait [#allocation6], 1024  }
   0xc   :  { %551 = vsyncadd [#allocation6], 4294966272  ;;  %v423_v0 = vld [vmem:[#allocation5 + $0x38] sm:$0xff]  ;;  %v422_v1 = vld [vmem:[#allocation5 + $0x30] sm:$0xff]  ;;  %s558_s0 = smov [#allocation7]   ;;  %s350_s23 = sshll.u32 %s711_s2, 4  ;;  %s351_s23 = int_to_ptr.hbm [resolvable:$true] %s350_s23 }
   0xd   :  { %146 = vmatpush.bf16.msra.mxu0 %v423_v0  ;;  %424 = vmatpush.bf16.msra.mxu1 %v423_v0  ;;  %v421_v2 = vld [vmem:[#allocation5 + $0x28] sm:$0xff]  ;;  %v420_v3 = vld [vmem:[#allocation5 + $0x20] sm:$0xff]  ;;  %v419_v4 = vld [vmem:[#allocation5 + $0x18] sm:$0xff]  ;;  %s348_s1 = sshll.u32 %s558_s0, 4  ;;  %s559_s24 = smov 128   ;;  %s349_s1 = int_to_ptr.vmem [resolvable:$true] %s348_s1 }
   0xe   :  { %425 = vmatpush.bf16.msra.mxu2 %v423_v0  ;;  %426 = vmatpush.bf16.msra.mxu3 %v423_v0  ;;  %v418_v5 = vld [vmem:[#allocation5 + $0x10] sm:$0xff]  ;;  %v417_v6 = vld [vmem:[#allocation5 + $0x8] sm:$0xff]  ;;  %v416_v7 = vld [vmem:[#allocation5] sm:$0xff]  ;;  %s560_s25 = smov 8  }
   0xf   :  { %v412_v8 = vld [vmem:[#allocation2] sm:$0xff]  ;;  %v413_v9 = vld [vmem:[#allocation2 + $0x8] sm:$0xff]  ;;  %v414_v10 = vld [vmem:[#allocation2 + $0x10] sm:$0xff] }
  0x10   :  { %v415_v11 = vld [vmem:[#allocation2 + $0x18] sm:$0xff] }
  0x11   :  { %147 = vmatpush.bf16.msra.mxu0 %v422_v1  ;;  %427 = vmatpush.bf16.msra.mxu1 %v422_v1 }
  0x12   :  { %428 = vmatpush.bf16.msra.mxu2 %v422_v1  ;;  %429 = vmatpush.bf16.msra.mxu3 %v422_v1 }
  0x15   :  { %148 = vmatpush.bf16.msra.mxu0 %v421_v2  ;;  %430 = vmatpush.bf16.msra.mxu1 %v421_v2 }
  0x16   :  { %431 = vmatpush.bf16.msra.mxu2 %v421_v2  ;;  %432 = vmatpush.bf16.msra.mxu3 %v421_v2 }
  0x19   :  { %149 = vmatpush.bf16.msra.mxu0 %v420_v3  ;;  %433 = vmatpush.bf16.msra.mxu1 %v420_v3 }
  0x1a   :  { %434 = vmatpush.bf16.msra.mxu2 %v420_v3  ;;  %435 = vmatpush.bf16.msra.mxu3 %v420_v3 }
  0x1d   :  { %150 = vmatpush.bf16.msra.mxu0 %v419_v4  ;;  %436 = vmatpush.bf16.msra.mxu1 %v419_v4 }
  0x1e   :  { %437 = vmatpush.bf16.msra.mxu2 %v419_v4  ;;  %438 = vmatpush.bf16.msra.mxu3 %v419_v4 }
  0x21   :  { %151 = vmatpush.bf16.msra.mxu0 %v418_v5  ;;  %439 = vmatpush.bf16.msra.mxu1 %v418_v5 }
  0x22   :  { %440 = vmatpush.bf16.msra.mxu2 %v418_v5  ;;  %441 = vmatpush.bf16.msra.mxu3 %v418_v5 }
  0x25   :  { %152 = vmatpush.bf16.msra.mxu0 %v417_v6  ;;  %442 = vmatpush.bf16.msra.mxu1 %v417_v6 }
  0x26   :  { %443 = vmatpush.bf16.msra.mxu2 %v417_v6  ;;  %444 = vmatpush.bf16.msra.mxu3 %v417_v6 }
  0x29   :  { %153 = vmatpush.bf16.msra.mxu0 %v416_v7  ;;  %445 = vmatpush.bf16.msra.mxu1 %v416_v7 }
  0x2a   :  { %446 = vmatpush.bf16.msra.mxu2 %v416_v7  ;;  %447 = vmatpush.bf16.msra.mxu3 %v416_v7 }
  0x2c   :  { %154 = vmatmul.bf16.vlgmr.msra.gmra.mxu0 %v412_v8  ;;  %159 = vmatmul.bf16.vlgmr.msra.gmra.mxu1 %v413_v9 }
  0x2d   :  { %164 = vmatmul.bf16.vlgmr.msra.gmra.mxu2 %v414_v10  ;;  %169 = vmatmul.bf16.vlgmr.msra.gmra.mxu3 %v415_v11 }
  0xa9   :  { %v582_v12 = vpop.f32.mrf.mxu0  ;;  %v584_v13 = vpop.f32.mrf.mxu1 }
  0xaa   :  { %v177_v14 = vmul.f32 %v584_v13, %v584_v13  ;;  %v175_v15 = vmul.f32 %v582_v12, %v582_v12 }
  0xac   :  { %187 = vadd.xlane.f32.xlu1 %v177_v14  ;;  %183 = vadd.xlane.f32.xlu0 %v175_v15 }
  0xb0   :  { %v590_v16 = vpop.f32.mrf.mxu2  ;;  %v592_v17 = vpop.f32.mrf.mxu3 }
  0xb1   :  { %v594_v18 = vpop.f32.mrf.mxu0  ;;  %v596_v19 = vpop.f32.mrf.mxu1  ;;  %v179_v20 = vmul.f32 %v590_v16, %v590_v16  ;;  %v181_v27 = vmul.f32 %v592_v17, %v592_v17 }
  0xb2   :  { %v176_v21 = vmul.f32 %v594_v18, %v594_v18  ;;  %v178_v22 = vmul.f32 %v596_v19, %v596_v19 }
  0xb3   :  { %191 = vadd.xlane.f32.xlu2 %v179_v20 }
  0xb4   :  { %189 = vadd.xlane.f32.xlu1 %v178_v22  ;;  %185 = vadd.xlane.f32.xlu0 %v176_v21 }
  0xb8   :  { %v604_v23 = vpop.f32.mrf.mxu2  ;;  %v606_v24 = vpop.f32.mrf.mxu3 }
  0xb9   :  { %v180_v25 = vmul.f32 %v604_v23, %v604_v23  ;;  %v182_v26 = vmul.f32 %v606_v24, %v606_v24 }
  0xbb   :  { %193 = vadd.xlane.f32.xlu2 %v180_v25 }
  0xbc   :  { %197 = vadd.xlane.f32.xlu1 %v182_v26  ;;  %195 = vadd.xlane.f32.xlu0 %v181_v27 }
 0x11f   :  { %v188_v28 = vpop.xlane.xlu1 %187  ;;  %v184_v29 = vpop.xlane.xlu0 %183 }
 0x120   :  { %v614_v30 = vmax.f32 %v188_v28, 1e-30  ;;  %v616_v31 = vmax.f32 %v184_v29, 1e-30 }
 0x122   :  { %456 = vrsqrt.f32 %v614_v30  ;;  %vm233_vm6 = vweird.f32 %v614_v30  ;;  %vm213_vm7 = vweird.f32 %v616_v31 }
 0x123   :  { %458 = vrsqrt.f32 %v616_v31 }
 0x126   :  { %v192_v32 = vpop.xlane.xlu2 %191 }
 0x127   :  { %v620_v33 = vmax.f32 %v192_v32, 1e-30  ;;  %v190_v34 = vpop.xlane.xlu1 %189  ;;  %v186_v35 = vpop.xlane.xlu0 %185 }
 0x128   :  { %v622_v36 = vpop.eup %456  ;;  %v202_v37 = vmax.f32 %v190_v34, 1e-30  ;;  %v200_v38 = vmax.f32 %v186_v35, 1e-30 }
 0x129   :  { %v624_v39 = vpop.eup %458  ;;  %v228_v40 = vmul.f32 %v622_v36, %v614_v30  ;;  %460 = vrsqrt.f32 %v620_v33  ;;  %vm234_vm1 = vweird.f32 %v622_v36  ;;  %vm253_vm11 = vweird.f32 %v620_v33 }
 0x12a   :  { %462 = vrsqrt.f32 %v202_v37  ;;  %v208_v41 = vmul.f32 %v624_v39, %v616_v31  ;;  %vm243_vm3 = vweird.f32 %v202_v37  ;;  %vm223_vm5 = vweird.f32 %v200_v38  ;;  %vm666_vm10 = vmor %vm233_vm6, %vm234_vm1 }
 0x12b   :  { %464 = vrsqrt.f32 %v200_v38  ;;  %v229_v42 = vmul.f32 %v622_v36, %v228_v40  ;;  %vm214_vm8 = vweird.f32 %v624_v39 }
 0x12c   :  { %v209_v45 = vmul.f32 %v624_v39, %v208_v41  ;;  %vm680_vm13 = vmor %vm213_vm7, %vm214_vm8 }
 0x12d   :  { %v230_v52 = vmul.f32 0.5, %v229_v42 }
 0x12e   :  { %v194_v43 = vpop.xlane.xlu2 %193  ;;  %v210_v57 = vmul.f32 0.5, %v209_v45 }
 0x12f   :  { %v632_v44 = vpop.eup %460  ;;  %v635_v46 = vmax.f32 %v194_v43, 1e-30  ;;  %v198_v47 = vpop.xlane.xlu1 %197  ;;  %v231_v60 = vsub.f32 1.5, %v230_v52 }
 0x130   :  { %v463_v48 = vpop.eup %462  ;;  %v248_v49 = vmul.f32 %v632_v44, %v620_v33  ;;  %v639_v50 = vmax.f32 %v198_v47, 1e-30  ;;  %v196_v56 = vpop.xlane.xlu0 %195  ;;  %v211_v2 = vsub.f32 1.5, %v210_v57  ;;  %vm254_vm12 = vweird.f32 %v632_v44 }
 0x131   :  { %v465_v51 = vpop.eup %464  ;;  %v238_v53 = vmul.f32 %v463_v48, %v202_v37  ;;  %466 = vrsqrt.f32 %v635_v46  ;;  %v644_v63 = vmax.f32 %v196_v56, 1e-30  ;;  %vm244_vm0 = vweird.f32 %v463_v48 }
 0x132   :  { %v249_v54 = vmul.f32 %v632_v44, %v248_v49  ;;  %v218_v55 = vmul.f32 %v465_v51, %v200_v38  ;;  %468 = vrsqrt.f32 %v639_v50  ;;  %vm224_vm2 = vweird.f32 %v465_v51  ;;  %vm650_vm4 = vmor %vm243_vm3, %vm244_vm0 }
 0x133   :  { %v239_v58 = vmul.f32 %v463_v48, %v238_v53  ;;  %470 = vrsqrt.f32 %v644_v63  ;;  %v232_v7 = vmul.f32 %v622_v36, %v231_v60  ;;  %v212_v20 = vmul.f32 %v624_v39, %v211_v2  ;;  %vm660_vm9 = vmor %vm223_vm5, %vm224_vm2 }
 0x134   :  { %v219_v59 = vmul.f32 %v465_v51, %v218_v55  ;;  %v250_v61 = vmul.f32 0.5, %v249_v54  ;;  %vm263_vm15 = vweird.f32 %v635_v46  ;;  %vm691_vm0 = vmor %vm253_vm11, %vm254_vm12  ;;  %vm283_vm3 = vweird.f32 %v639_v50 }
 0x135   :  { %v240_v62 = vmul.f32 0.5, %v239_v58  ;;  %v236_v30 = vsel %vm666_vm10, %v622_v36, %v232_v7  ;;  %v216_v38 = vsel %vm680_vm13, %v624_v39, %v212_v20  ;;  %vm273_vm6 = vweird.f32 %v644_v63 }
 0x136   :  { %v220_v0 = vmul.f32 0.5, %v219_v59  ;;  %v251_v8 = vsub.f32 1.5, %v250_v61  ;;  %v287_v47 = vmul.f32 %v216_v38, %v582_v12 }
 0x137   :  { %v467_v1 = vpop.eup %466  ;;  %v241_v3 = vsub.f32 1.5, %v240_v62 }
 0x138   :  { %v221_v4 = vsub.f32 1.5, %v220_v0  ;;  %v258_v5 = vmul.f32 %v467_v1, %v635_v46  ;;  %v469_v6 = vpop.eup %468  ;;  %v252_v31 = vmul.f32 %v632_v44, %v251_v8  ;;  %vm264_vm14 = vweird.f32 %v467_v1 }
 0x139   :  { %v242_v9 = vmul.f32 %v463_v48, %v241_v3  ;;  %v278_v15 = vmul.f32 %v469_v6, %v639_v50  ;;  %v471_v29 = vpop.eup %470  ;;  %vm284_vm1 = vweird.f32 %v469_v6  ;;  %vm265_vm2 = vmor %vm263_vm15, %vm264_vm14  ;;  %v289_v46 = vmul.f32 %v236_v30, %v584_v13 }
 0x13a   :  { %v222_v11 = vmul.f32 %v465_v51, %v221_v4  ;;  %v259_v14 = vmul.f32 %v467_v1, %v258_v5  ;;  %v268_v37 = vmul.f32 %v471_v29, %v644_v63  ;;  %v256_v39 = vsel %vm691_vm0, %v632_v44, %v252_v31 }
 0x13b   :  { %v246_v25 = vsel %vm650_vm4, %v463_v48, %v242_v9  ;;  %v279_v28 = vmul.f32 %v469_v6, %v278_v15  ;;  %vm285_vm4 = vmor %vm283_vm3, %vm284_vm1  ;;  %vm274_vm5 = vweird.f32 %v471_v29  ;;  %v291_v50 = vmul.f32 %v256_v39, %v590_v16 }
 0x13c   :  { %v226_v26 = vsel %vm660_vm9, %v465_v51, %v222_v11  ;;  %v260_v27 = vmul.f32 0.5, %v259_v14  ;;  %v290_v36 = vmul.f32 %v246_v25, %v596_v19  ;;  %v269_v43 = vmul.f32 %v471_v29, %v268_v37  ;;  %vm275_vm7 = vmor %vm273_vm6, %vm274_vm5 }
 0x13d   :  { %v280_v35 = vmul.f32 0.5, %v279_v28  ;;  %v288_v40 = vmul.f32 %v226_v26, %v594_v18  ;;  %v297_v55 = vadd.f32 %v289_v46, %v287_v47 }
 0x13e   :  { %v261_v34 = vsub.f32 1.5, %v260_v27  ;;  %v270_v18 = vmul.f32 0.5, %v269_v43 }
 0x13f   :  { %v281_v42 = vsub.f32 1.5, %v280_v35  ;;  %v300_v48 = vadd.f32 %v290_v36, %v288_v40  ;;  %v298_v12 = vadd.f32 %v297_v55, %v291_v50 }
 0x140   :  { %v262_v41 = vmul.f32 %v467_v1, %v261_v34  ;;  %v271_v52 = vsub.f32 1.5, %v270_v18 }
 0x141   :  { %v282_v45 = vmul.f32 %v469_v6, %v281_v42 }
 0x142   :  { %v266_v19 = vsel %vm265_vm2, %v467_v1, %v262_v41  ;;  %v272_v44 = vmul.f32 %v471_v29, %v271_v52 }
 0x143   :  { %v292_v49 = vmul.f32 %v266_v19, %v604_v23  ;;  %v286_v51 = vsel %vm285_vm4, %v469_v6, %v282_v45 }
 0x144   :  { %v294_v54 = vmul.f32 %v286_v51, %v606_v24  ;;  %v276_v13 = vsel %vm275_vm7, %v471_v29, %v272_v44 }
 0x145   :  { %v301_v53 = vadd.f32 %v300_v48, %v292_v49  ;;  %v293_v57 = vmul.f32 %v276_v13, %v592_v17 }
 0x147   :  { %v302_v56 = vadd.f32 %v301_v53, %v294_v54  ;;  %v299_v23 = vadd.f32 %v298_v12, %v293_v57 }
 0x149   :  { %v313_v58 = vmul.f32 %v302_v56, %v302_v56  ;;  %v312_v59 = vmul.f32 %v299_v23, %v299_v23 }
 0x14b   :  { %316 = vadd.xlane.f32.xlu0 %v313_v58  ;;  %314 = vadd.xlane.f32.xlu2 %v312_v59 }
 0x1be   :  { %v317_v60 = vpop.xlane.xlu0 %316  ;;  %v315_v61 = vpop.xlane.xlu2 %314 }
 0x1bf   :  { %v319_v16 = vmax.f32 %v317_v60, 1e-30  ;;  %v318_v24 = vmax.f32 %v315_v61, 1e-30 }
 0x1c1   :  { %472 = vrsqrt.f32 %v319_v16  ;;  %vm336_vm9 = vweird.f32 %v319_v16  ;;  %vm326_vm12 = vweird.f32 %v318_v24 }
 0x1c2   :  { %474 = vrsqrt.f32 %v318_v24 }
 0x1c7   :  { %v473_v62 = vpop.eup %472 }
 0x1c8   :  { %v331_v63 = vmul.f32 %v473_v62, %v319_v16  ;;  %v475_v1 = vpop.eup %474  ;;  %vm337_vm8 = vweird.f32 %v473_v62 }
 0x1c9   :  { %v321_v3 = vmul.f32 %v475_v1, %v318_v24  ;;  %vm338_vm10 = vmor %vm336_vm9, %vm337_vm8  ;;  %vm327_vm11 = vweird.f32 %v475_v1 }
 0x1ca   :  { %v332_v0 = vmul.f32 %v473_v62, %v331_v63  ;;  %vm328_vm13 = vmor %vm326_vm12, %vm327_vm11 }
 0x1cb   :  { %v322_v17 = vmul.f32 %v475_v1, %v321_v3 }
 0x1cc   :  { %v333_v2 = vmul.f32 0.5, %v332_v0 }
 0x1cd   :  { %v323_v6 = vmul.f32 0.5, %v322_v17 }
 0x1ce   :  { %v334_v4 = vsub.f32 1.5, %v333_v2 }
 0x1cf   :  { %v324_v8 = vsub.f32 1.5, %v323_v6 }
 0x1d0   :  { %v335_v5 = vmul.f32 %v473_v62, %v334_v4 }
 0x1d1   :  { %v325_v10 = vmul.f32 %v475_v1, %v324_v8 }
 0x1d2   :  { %v339_v7 = vsel %vm338_vm10, %v473_v62, %v335_v5 }
 0x1d3   :  { %v341_v9 = vmul.f32 %v339_v7, %v302_v56  ;;  %v329_v11 = vsel %vm328_vm13, %v475_v1, %v325_v10 }
 0x1d4   :  { %v340_v14 = vmul.f32 %v329_v11, %v299_v23 }
 0x1d5   :  { %343 = vst [vmem:[#allocation7 + $0x8] sm:$0xff] %v341_v9 }
 0x1d6   :  { %342 = vst [vmem:[#allocation7] sm:$0xff] %v340_v14 }
 0x1d7   :  { %356 = dma.vmem_to_hbm [thread:$0]  %s349_s1, 256, %s351_s23, [#allocation4], %s559_s24, %s559_s24, %s560_s25  }
 0x1d8   :  { %552 = dma.done.wait [#allocation4], 256  }
 0x1d9   :  { %553 = vsyncadd [#allocation4], 4294967040 }
 0x1da   :  { %361 = vsyncpa [#allocation3], 1 }
 0x1db   :  { %362 = vsyncpa [#allocation6], 1 }
 0x1dc   :  { %363 = vsyncpa [#allocation4], 1 }

// kernel: tpu_custom_call.1
= control target key start
LH: loop header
LB: loop body
LE: loop exit
PB: predicated region body
PF: predicated region fallthrough
CT: control target
= control target key end

     0   :  { %7 = vsyncpa [#allocation3], 0  ;;  %s709_s0 = inlined_call_operand.hbm [shape: bf16[4,16,128], index: 0, kind: input, shape index: {}]   ;;  %s710_s1 = inlined_call_operand.hbm [shape: bf16[128,128], index: 1, kind: input, shape index: {}]   ;;  %s711_s2 = inlined_call_operand.hbm [shape: f32[16,128], index: 2, kind: output, shape index: {}]  }
   0x1   :  { %8 = vsyncpa [#allocation6], 0 }
   0x2   :  { %9 = vsyncpa [#allocation4], 0  ;;  %s14_s11 = sshll.u32 %s709_s0, 4  ;;  %s554_s12 = smov [#allocation2]   ;;  %s15_s11 = int_to_ptr.hbm [resolvable:$true] %s14_s11 }
   0x3   :  { %s16_s13 = sshll.u32 %s554_s12, 4  ;;  %s27_s16 = sshll.u32 %s710_s1, 4  ;;  %s17_s13 = int_to_ptr.vmem [resolvable:$true] %s16_s13  ;;  %s28_s16 = int_to_ptr.hbm [resolvable:$true] %s27_s16 }
   0x4   :  { %s555_s17 = smov 64   ;;  %s556_s18 = smov 4  }
   0x5   :  { %22 = dma.hbm_to_vmem [thread:$0]  %s15_s11, 512, %s17_s13, [#allocation3], %s555_s17, %s555_s17, %s556_s18  }
   0x6   :  { %s557_s19 = smov [#allocation5]  }
   0x7   :  { %s29_s20 = sshll.u32 %s557_s19, 4  ;;  %s30_s20 = int_to_ptr.vmem [resolvable:$true] %s29_s20 }
   0x8   :  { %35 = dma.hbm_to_vmem [thread:$0]  %s28_s16, 1024, %s30_s20, [#allocation6], %s555_s17, %s555_s17, %s556_s18  }
   0x9   :  { %548 = dma.done.wait [#allocation3], 512  }
   0xa   :  { %549 = vsyncadd [#allocation3], 4294966784 }
   0xb   :  { %550 = dma.done.wait [#allocation6], 1024  }
   0xc   :  { %551 = vsyncadd [#allocation6], 4294966272  ;;  %v423_v0 = vld [vmem:[#allocation5 + $0x38] sm:$0xff]  ;;  %v422_v1 = vld [vmem:[#allocation5 + $0x30] sm:$0xff]  ;;  %s558_s0 = smov [#allocation7]   ;;  %s350_s23 = sshll.u32 %s711_s2, 4  ;;  %s351_s23 = int_to_ptr.hbm [resolvable:$true] %s350_s23 }
   0xd   :  { %146 = vmatpush.bf16.msra.mxu0 %v423_v0  ;;  %424 = vmatpush.bf16.msra.mxu1 %v423_v0  ;;  %v421_v2 = vld [vmem:[#allocation5 + $0x28] sm:$0xff]  ;;  %v420_v3 = vld [vmem:[#allocation5 + $0x20] sm:$0xff]  ;;  %v419_v4 = vld [vmem:[#allocation5 + $0x18] sm:$0xff]  ;;  %s348_s1 = sshll.u32 %s558_s0, 4  ;;  %s559_s24 = smov 128   ;;  %s349_s1 = int_to_ptr.vmem [resolvable:$true] %s348_s1 }
   0xe   :  { %425 = vmatpush.bf16.msra.mxu2 %v423_v0  ;;  %426 = vmatpush.bf16.msra.mxu3 %v423_v0  ;;  %v418_v5 = vld [vmem:[#allocation5 + $0x10] sm:$0xff]  ;;  %v417_v6 = vld [vmem:[#allocation5 + $0x8] sm:$0xff]  ;;  %v416_v7 = vld [vmem:[#allocation5] sm:$0xff]  ;;  %s560_s25 = smov 8  }
   0xf   :  { %v412_v8 = vld [vmem:[#allocation2] sm:$0xff]  ;;  %v413_v9 = vld [vmem:[#allocation2 + $0x8] sm:$0xff]  ;;  %v414_v10 = vld [vmem:[#allocation2 + $0x10] sm:$0xff] }
  0x10   :  { %v415_v11 = vld [vmem:[#allocation2 + $0x18] sm:$0xff] }
  0x11   :  { %147 = vmatpush.bf16.msra.mxu0 %v422_v1  ;;  %427 = vmatpush.bf16.msra.mxu1 %v422_v1 }
  0x12   :  { %428 = vmatpush.bf16.msra.mxu2 %v422_v1  ;;  %429 = vmatpush.bf16.msra.mxu3 %v422_v1 }
  0x15   :  { %148 = vmatpush.bf16.msra.mxu0 %v421_v2  ;;  %430 = vmatpush.bf16.msra.mxu1 %v421_v2 }
  0x16   :  { %431 = vmatpush.bf16.msra.mxu2 %v421_v2  ;;  %432 = vmatpush.bf16.msra.mxu3 %v421_v2 }
  0x19   :  { %149 = vmatpush.bf16.msra.mxu0 %v420_v3  ;;  %433 = vmatpush.bf16.msra.mxu1 %v420_v3 }
  0x1a   :  { %434 = vmatpush.bf16.msra.mxu2 %v420_v3  ;;  %435 = vmatpush.bf16.msra.mxu3 %v420_v3 }
  0x1d   :  { %150 = vmatpush.bf16.msra.mxu0 %v419_v4  ;;  %436 = vmatpush.bf16.msra.mxu1 %v419_v4 }
  0x1e   :  { %437 = vmatpush.bf16.msra.mxu2 %v419_v4  ;;  %438 = vmatpush.bf16.msra.mxu3 %v419_v4 }
  0x21   :  { %151 = vmatpush.bf16.msra.mxu0 %v418_v5  ;;  %439 = vmatpush.bf16.msra.mxu1 %v418_v5 }
  0x22   :  { %440 = vmatpush.bf16.msra.mxu2 %v418_v5  ;;  %441 = vmatpush.bf16.msra.mxu3 %v418_v5 }
  0x25   :  { %152 = vmatpush.bf16.msra.mxu0 %v417_v6  ;;  %442 = vmatpush.bf16.msra.mxu1 %v417_v6 }
  0x26   :  { %443 = vmatpush.bf16.msra.mxu2 %v417_v6  ;;  %444 = vmatpush.bf16.msra.mxu3 %v417_v6 }
  0x29   :  { %153 = vmatpush.bf16.msra.mxu0 %v416_v7  ;;  %445 = vmatpush.bf16.msra.mxu1 %v416_v7 }
  0x2a   :  { %446 = vmatpush.bf16.msra.mxu2 %v416_v7  ;;  %447 = vmatpush.bf16.msra.mxu3 %v416_v7 }
  0x2c   :  { %154 = vmatmul.bf16.vlgmr.msra.gmra.mxu0 %v412_v8  ;;  %159 = vmatmul.bf16.vlgmr.msra.gmra.mxu1 %v413_v9 }
  0x2d   :  { %164 = vmatmul.bf16.vlgmr.msra.gmra.mxu2 %v414_v10  ;;  %169 = vmatmul.bf16.vlgmr.msra.gmra.mxu3 %v415_v11 }
  0xa9   :  { %v582_v12 = vpop.f32.mrf.mxu0  ;;  %v584_v13 = vpop.f32.mrf.mxu1 }
  0xaa   :  { %v177_v14 = vmul.f32 %v584_v13, %v584_v13  ;;  %v175_v15 = vmul.f32 %v582_v12, %v582_v12 }
  0xac   :  { %187 = vadd.xlane.f32.xlu1 %v177_v14  ;;  %183 = vadd.xlane.f32.xlu0 %v175_v15 }
  0xb0   :  { %v590_v16 = vpop.f32.mrf.mxu2  ;;  %v592_v17 = vpop.f32.mrf.mxu3 }
  0xb1   :  { %v594_v18 = vpop.f32.mrf.mxu0  ;;  %v596_v19 = vpop.f32.mrf.mxu1  ;;  %v179_v20 = vmul.f32 %v590_v16, %v590_v16  ;;  %v181_v27 = vmul.f32 %v592_v17, %v592_v17 }
  0xb2   :  { %v176_v21 = vmul.f32 %v594_v18, %v594_v18  ;;  %v178_v22 = vmul.f32 %v596_v19, %v596_v19 }
  0xb3   :  { %191 = vadd.xlane.f32.xlu2 %v179_v20 }
  0xb4   :  { %189 = vadd.xlane.f32.xlu1 %v178_v22  ;;  %185 = vadd.xlane.f32.xlu0 %v176_v21 }
  0xb8   :  { %v604_v23 = vpop.f32.mrf.mxu2  ;;  %v606_v24 = vpop.f32.mrf.mxu3 }
  0xb9   :  { %v180_v25 = vmul.f32 %v604_v23, %v604_v23  ;;  %v182_v26 = vmul.f32 %v606_v24, %v606_v24 }
  0xbb   :  { %193 = vadd.xlane.f32.xlu2 %v180_v25 }
  0xbc   :  { %197 = vadd.xlane.f32.xlu1 %v182_v26  ;;  %195 = vadd.xlane.f32.xlu0 %v181_v27 }
 0x11f   :  { %v188_v28 = vpop.xlane.xlu1 %187  ;;  %v184_v29 = vpop.xlane.xlu0 %183 }
 0x120   :  { %v614_v30 = vmax.f32 %v188_v28, 1e-30  ;;  %v616_v31 = vmax.f32 %v184_v29, 1e-30 }
 0x122   :  { %456 = vrsqrt.f32 %v614_v30  ;;  %vm233_vm6 = vweird.f32 %v614_v30  ;;  %vm213_vm7 = vweird.f32 %v616_v31 }
 0x123   :  { %458 = vrsqrt.f32 %v616_v31 }
 0x126   :  { %v192_v32 = vpop.xlane.xlu2 %191 }
 0x127   :  { %v620_v33 = vmax.f32 %v192_v32, 1e-30  ;;  %v190_v34 = vpop.xlane.xlu1 %189  ;;  %v186_v35 = vpop.xlane.xlu0 %185 }
 0x128   :  { %v622_v36 = vpop.eup %456  ;;  %v202_v37 = vmax.f32 %v190_v34, 1e-30  ;;  %v200_v38 = vmax.f32 %v186_v35, 1e-30 }
 0x129   :  { %v624_v39 = vpop.eup %458  ;;  %v228_v40 = vmul.f32 %v622_v36, %v614_v30  ;;  %460 = vrsqrt.f32 %v620_v33  ;;  %vm234_vm1 = vweird.f32 %v622_v36  ;;  %vm253_vm11 = vweird.f32 %v620_v33 }
 0x12a   :  { %462 = vrsqrt.f32 %v202_v37  ;;  %v208_v41 = vmul.f32 %v624_v39, %v616_v31  ;;  %vm243_vm3 = vweird.f32 %v202_v37  ;;  %vm223_vm5 = vweird.f32 %v200_v38  ;;  %vm666_vm10 = vmor %vm233_vm6, %vm234_vm1 }
 0x12b   :  { %464 = vrsqrt.f32 %v200_v38  ;;  %v229_v42 = vmul.f32 %v622_v36, %v228_v40  ;;  %vm214_vm8 = vweird.f32 %v624_v39 }
 0x12c   :  { %v209_v45 = vmul.f32 %v624_v39, %v208_v41  ;;  %vm680_vm13 = vmor %vm213_vm7, %vm214_vm8 }
 0x12d   :  { %v230_v52 = vmul.f32 0.5, %v229_v42 }
 0x12e   :  { %v194_v43 = vpop.xlane.xlu2 %193  ;;  %v210_v57 = vmul.f32 0.5, %v209_v45 }
 0x12f   :  { %v632_v44 = vpop.eup %460  ;;  %v635_v46 = vmax.f32 %v194_v43, 1e-30  ;;  %v198_v47 = vpop.xlane.xlu1 %197  ;;  %v231_v60 = vsub.f32 1.5, %v230_v52 }
 0x130   :  { %v463_v48 = vpop.eup %462  ;;  %v248_v49 = vmul.f32 %v632_v44, %v620_v33  ;;  %v639_v50 = vmax.f32 %v198_v47, 1e-30  ;;  %v196_v56 = vpop.xlane.xlu0 %195  ;;  %v211_v2 = vsub.f32 1.5, %v210_v57  ;;  %vm254_vm12 = vweird.f32 %v632_v44 }
 0x131   :  { %v465_v51 = vpop.eup %464  ;;  %v238_v53 = vmul.f32 %v463_v48, %v202_v37  ;;  %466 = vrsqrt.f32 %v635_v46  ;;  %v644_v63 = vmax.f32 %v196_v56, 1e-30  ;;  %vm244_vm0 = vweird.f32 %v463_v48 }
 0x132   :  { %v249_v54 = vmul.f32 %v632_v44, %v248_v49  ;;  %v218_v55 = vmul.f32 %v465_v51, %v200_v38  ;;  %468 = vrsqrt.f32 %v639_v50  ;;  %vm224_vm2 = vweird.f32 %v465_v51  ;;  %vm650_vm4 = vmor %vm243_vm3, %vm244_vm0 }
 0x133   :  { %v239_v58 = vmul.f32 %v463_v48, %v238_v53  ;;  %470 = vrsqrt.f32 %v644_v63  ;;  %v232_v7 = vmul.f32 %v622_v36, %v231_v60  ;;  %v212_v20 = vmul.f32 %v624_v39, %v211_v2  ;;  %vm660_vm9 = vmor %vm223_vm5, %vm224_vm2 }
 0x134   :  { %v219_v59 = vmul.f32 %v465_v51, %v218_v55  ;;  %v250_v61 = vmul.f32 0.5, %v249_v54  ;;  %vm263_vm15 = vweird.f32 %v635_v46  ;;  %vm691_vm0 = vmor %vm253_vm11, %vm254_vm12  ;;  %vm283_vm3 = vweird.f32 %v639_v50 }
 0x135   :  { %v240_v62 = vmul.f32 0.5, %v239_v58  ;;  %v236_v30 = vsel %vm666_vm10, %v622_v36, %v232_v7  ;;  %v216_v38 = vsel %vm680_vm13, %v624_v39, %v212_v20  ;;  %vm273_vm6 = vweird.f32 %v644_v63 }
 0x136   :  { %v220_v0 = vmul.f32 0.5, %v219_v59  ;;  %v251_v8 = vsub.f32 1.5, %v250_v61  ;;  %v287_v47 = vmul.f32 %v216_v38, %v582_v12 }
 0x137   :  { %v467_v1 = vpop.eup %466  ;;  %v241_v3 = vsub.f32 1.5, %v240_v62 }
 0x138   :  { %v221_v4 = vsub.f32 1.5, %v220_v0  ;;  %v258_v5 = vmul.f32 %v467_v1, %v635_v46  ;;  %v469_v6 = vpop.eup %468  ;;  %v252_v31 = vmul.f32 %v632_v44, %v251_v8  ;;  %vm264_vm14 = vweird.f32 %v467_v1 }
 0x139   :  { %v242_v9 = vmul.f32 %v463_v48, %v241_v3  ;;  %v278_v15 = vmul.f32 %v469_v6, %v639_v50  ;;  %v471_v29 = vpop.eup %470  ;;  %vm284_vm1 = vweird.f32 %v469_v6  ;;  %vm265_vm2 = vmor %vm263_vm15, %vm264_vm14  ;;  %v289_v46 = vmul.f32 %v236_v30, %v584_v13 }
 0x13a   :  { %v222_v11 = vmul.f32 %v465_v51, %v221_v4  ;;  %v259_v14 = vmul.f32 %v467_v1, %v258_v5  ;;  %v268_v37 = vmul.f32 %v471_v29, %v644_v63  ;;  %v256_v39 = vsel %vm691_vm0, %v632_v44, %v252_v31 }
 0x13b   :  { %v246_v25 = vsel %vm650_vm4, %v463_v48, %v242_v9  ;;  %v279_v28 = vmul.f32 %v469_v6, %v278_v15  ;;  %vm285_vm4 = vmor %vm283_vm3, %vm284_vm1  ;;  %vm274_vm5 = vweird.f32 %v471_v29  ;;  %v291_v50 = vmul.f32 %v256_v39, %v590_v16 }
 0x13c   :  { %v226_v26 = vsel %vm660_vm9, %v465_v51, %v222_v11  ;;  %v260_v27 = vmul.f32 0.5, %v259_v14  ;;  %v290_v36 = vmul.f32 %v246_v25, %v596_v19  ;;  %v269_v43 = vmul.f32 %v471_v29, %v268_v37  ;;  %vm275_vm7 = vmor %vm273_vm6, %vm274_vm5 }
 0x13d   :  { %v280_v35 = vmul.f32 0.5, %v279_v28  ;;  %v288_v40 = vmul.f32 %v226_v26, %v594_v18  ;;  %v297_v55 = vadd.f32 %v289_v46, %v287_v47 }
 0x13e   :  { %v261_v34 = vsub.f32 1.5, %v260_v27  ;;  %v270_v18 = vmul.f32 0.5, %v269_v43 }
 0x13f   :  { %v281_v42 = vsub.f32 1.5, %v280_v35  ;;  %v300_v48 = vadd.f32 %v290_v36, %v288_v40  ;;  %v298_v12 = vadd.f32 %v297_v55, %v291_v50 }
 0x140   :  { %v262_v41 = vmul.f32 %v467_v1, %v261_v34  ;;  %v271_v52 = vsub.f32 1.5, %v270_v18 }
 0x141   :  { %v282_v45 = vmul.f32 %v469_v6, %v281_v42 }
 0x142   :  { %v266_v19 = vsel %vm265_vm2, %v467_v1, %v262_v41  ;;  %v272_v44 = vmul.f32 %v471_v29, %v271_v52 }
 0x143   :  { %v292_v49 = vmul.f32 %v266_v19, %v604_v23  ;;  %v286_v51 = vsel %vm285_vm4, %v469_v6, %v282_v45 }
 0x144   :  { %v294_v54 = vmul.f32 %v286_v51, %v606_v24  ;;  %v276_v13 = vsel %vm275_vm7, %v471_v29, %v272_v44 }
 0x145   :  { %v301_v53 = vadd.f32 %v300_v48, %v292_v49  ;;  %v293_v57 = vmul.f32 %v276_v13, %v592_v17 }
 0x147   :  { %v302_v56 = vadd.f32 %v301_v53, %v294_v54  ;;  %v299_v23 = vadd.f32 %v298_v12, %v293_v57 }
 0x149   :  { %v313_v58 = vmul.f32 %v302_v56, %v302_v56  ;;  %v312_v59 = vmul.f32 %v299_v23, %v299_v23 }
 0x14b   :  { %316 = vadd.xlane.f32.xlu0 %v313_v58  ;;  %314 = vadd.xlane.f32.xlu2 %v312_v59 }
 0x1be   :  { %v317_v60 = vpop.xlane.xlu0 %316  ;;  %v315_v61 = vpop.xlane.xlu2 %314 }
 0x1bf   :  { %v319_v16 = vmax.f32 %v317_v60, 1e-30  ;;  %v318_v24 = vmax.f32 %v315_v61, 1e-30 }
 0x1c1   :  { %472 = vrsqrt.f32 %v319_v16  ;;  %vm336_vm9 = vweird.f32 %v319_v16  ;;  %vm326_vm12 = vweird.f32 %v318_v24 }
 0x1c2   :  { %474 = vrsqrt.f32 %v318_v24 }
 0x1c7   :  { %v473_v62 = vpop.eup %472 }
 0x1c8   :  { %v331_v63 = vmul.f32 %v473_v62, %v319_v16  ;;  %v475_v1 = vpop.eup %474  ;;  %vm337_vm8 = vweird.f32 %v473_v62 }
 0x1c9   :  { %v321_v3 = vmul.f32 %v475_v1, %v318_v24  ;;  %vm338_vm10 = vmor %vm336_vm9, %vm337_vm8  ;;  %vm327_vm11 = vweird.f32 %v475_v1 }
 0x1ca   :  { %v332_v0 = vmul.f32 %v473_v62, %v331_v63  ;;  %vm328_vm13 = vmor %vm326_vm12, %vm327_vm11 }
 0x1cb   :  { %v322_v17 = vmul.f32 %v475_v1, %v321_v3 }
 0x1cc   :  { %v333_v2 = vmul.f32 0.5, %v332_v0 }
 0x1cd   :  { %v323_v6 = vmul.f32 0.5, %v322_v17 }
 0x1ce   :  { %v334_v4 = vsub.f32 1.5, %v333_v2 }
 0x1cf   :  { %v324_v8 = vsub.f32 1.5, %v323_v6 }
 0x1d0   :  { %v335_v5 = vmul.f32 %v473_v62, %v334_v4 }
 0x1d1   :  { %v325_v10 = vmul.f32 %v475_v1, %v324_v8 }
 0x1d2   :  { %v339_v7 = vsel %vm338_vm10, %v473_v62, %v335_v5 }
 0x1d3   :  { %v341_v9 = vmul.f32 %v339_v7, %v302_v56  ;;  %v329_v11 = vsel %vm328_vm13, %v475_v1, %v325_v10 }
 0x1d4   :  { %v340_v14 = vmul.f32 %v329_v11, %v299_v23 }
 0x1d5   :  { %343 = vst [vmem:[#allocation7 + $0x8] sm:$0xff] %v341_v9 }
 0x1d6   :  { %342 = vst [vmem:[#allocation7] sm:$0xff] %v340_v14 }
 0x1d7   :  { %356 = dma.vmem_to_hbm [thread:$0]  %s349_s1, 256, %s351_s23, [#allocation4], %s559_s24, %s559_s24, %s560_s25  }
 0x1d8   :  { %552 = dma.done.wait [#allocation4], 256  }
 0x1d9   :  { %553 = vsyncadd [#allocation4], 4294967040 }
 0x1da   :  { %361 = vsyncpa [#allocation3], 1 }
 0x1db   :  { %362 = vsyncpa [#allocation6], 1 }
 0x1dc   :  { %363 = vsyncpa [#allocation4], 1 }

</bundles_post_ra>
